<compile_context>
chip_gen: v7x
topology: tpu7x:2x2x1
jax: 0.10.0
libtpu: 0.0.40
codegen_flags: <defaults>
</compile_context>

<pallas_src>
import jax
import jax.numpy as jnp
from jax.experimental import pallas as pl
from jax.experimental.pallas import tpu as pltpu


def _round_up(x, m):
    return ((x + m - 1) // m) * m


def _mlp_kernel(x_ref, w1_ref, b1_ref, w2_ref, b2_ref, w3_ref, b3_ref, o_ref):
    # One batch tile per grid step; all three matmuls + bias + ReLU fused,
    # accumulating in f32 on the MXU.
    x = x_ref[...]
    h1 = jnp.dot(x, w1_ref[...], preferred_element_type=jnp.float32) + b1_ref[...]
    h1 = jnp.maximum(h1, 0.0)
    h2 = jnp.dot(h1, w2_ref[...], preferred_element_type=jnp.float32) + b2_ref[...]
    h2 = jnp.maximum(h2, 0.0)
    out = jnp.dot(h2, w3_ref[...], preferred_element_type=jnp.float32) + b3_ref[...]
    o_ref[...] = out.astype(o_ref.dtype)


def _vmem_bytes(tb, din, hidden, dout_p, itemsize=4):
    """Estimated VMEM footprint of one pipeline configuration."""
    acts = 2 * tb * din + 2 * tb * dout_p      # double-buffered x / out tiles
    acts += 2 * tb * hidden                    # h1 / h2 intermediates
    wts = din * hidden + hidden * hidden + hidden * dout_p + 2 * hidden + dout_p
    return (acts + wts) * itemsize             # weights single-buffered


def _vmem_budget_bytes():
    # v7x has only 64 MiB VMEM per TensorCore (half of v5e/v6e) and a 32 MiB
    # default scoped limit; budget conservatively so one tile size works on
    # every generation and leaves headroom for compiler scratch.
    try:
        cap = pltpu.get_tpu_info().vmem_capacity_bytes
    except Exception:  # pragma: no cover - fall back to v7x capacity
        cap = 64 * 1024 * 1024
    return min(cap // 2, 32 * 1024 * 1024)


def _pick_batch_tile(B, din, hidden, dout_p, budget):
    """Largest power-of-two tile (multiple of 8, <=1024) that fits the VMEM
    budget while leaving >=4 grid steps (>=2 for small batches) so the
    pipeline has DMAs to overlap and v7x can shard the batch across 2 TCs."""
    if B <= 8:
        return B
    best, tb = 8, 8
    while tb <= 1024 and tb * 4 <= B and _vmem_bytes(tb, din, hidden, dout_p) <= budget:
        best = tb
        tb *= 2
    return best


def value_function_forward(x, params, *, batch_tile=None):
    """Fused forward pass of the ValueFunction MLP.

    x:      (B, input_dim) float32
    params: dict with w1 (Din,H), b1 (1,H), w2 (H,H), b2 (1,H),
            w3 (H,Dout), b3 (1,Dout)
    batch_tile: optional override; must be a multiple of 8 (or equal to B).
    """
    w1, b1 = params["w1"], params["b1"]
    w2, b2 = params["w2"], params["b2"]
    w3, b3 = params["w3"], params["b3"]

    # Normalize biases to (1, features) rows (TPU lane layout).
    b1 = b1.reshape(1, -1)
    b2 = b2.reshape(1, -1)
    b3 = b3.reshape(1, -1)

    B, din = x.shape
    hidden = w1.shape[1]
    dout = w3.shape[1]

    # Lane-dense output: pad the output feature dim to a multiple of 128 so
    # the output store is an unmasked full-lane vst; slice the pad off after.
    dout_p = _round_up(dout, 128)
    if dout_p != dout:
        w3 = jnp.pad(w3, ((0, 0), (0, dout_p - dout)))
        b3 = jnp.pad(b3, ((0, 0), (0, dout_p - dout)))

    budget = _vmem_budget_bytes()
    tb = (batch_tile if batch_tile is not None
          else _pick_batch_tile(B, din, hidden, dout_p, budget))
    assert tb == B or tb % 8 == 0, "batch_tile must be a multiple of 8 (sublane)"

    # Pad the batch so it divides evenly into tiles; padded rows sliced off.
    B_pad = _round_up(B, tb)
    if B_pad != B:
        x = jnp.pad(x, ((0, B_pad - B), (0, 0)))
    grid = (B_pad // tb,)

    # Weights / biases never change across the grid -> single-buffer them
    # (constant index_map means they are DMA'd once; Buffered(1) also avoids
    # allocating a useless second buffer, which buys a bigger batch tile).
    single = pl.Buffered(buffer_count=1)
    in_specs = [
        pl.BlockSpec((tb, din), lambda i: (i, 0)),                              # x tile
        pl.BlockSpec((din, hidden), lambda i: (0, 0), pipeline_mode=single),    # w1
        pl.BlockSpec((1, hidden), lambda i: (0, 0), pipeline_mode=single),      # b1
        pl.BlockSpec((hidden, hidden), lambda i: (0, 0), pipeline_mode=single), # w2
        pl.BlockSpec((1, hidden), lambda i: (0, 0), pipeline_mode=single),      # b2
        pl.BlockSpec((hidden, dout_p), lambda i: (0, 0), pipeline_mode=single), # w3
        pl.BlockSpec((1, dout_p), lambda i: (0, 0), pipeline_mode=single),      # b3
    ]

    flops = 2 * B_pad * (din * hidden + hidden * hidden + hidden * dout_p)
    bytes_accessed = 4 * (
        B_pad * din + B_pad * dout_p
        + din * hidden + hidden * hidden + hidden * dout_p
        + 2 * hidden + dout_p
    )
    vmem_limit = int(min(48 * 1024 * 1024,
                         max(16 * 1024 * 1024,
                             2 * _vmem_bytes(tb, din, hidden, dout_p))))

    out = pl.pallas_call(
        _mlp_kernel,
        out_shape=jax.ShapeDtypeStruct((B_pad, dout_p), x.dtype),
        grid_spec=pltpu.PrefetchScalarGridSpec(
            num_scalar_prefetch=0,
            grid=grid,
            in_specs=in_specs,
            out_specs=pl.BlockSpec((tb, dout_p), lambda i: (i, 0)),
        ),
        compiler_params=pltpu.CompilerParams(
            dimension_semantics=("parallel",),
            vmem_limit_bytes=vmem_limit,
        ),
        cost_estimate=pl.CostEstimate(
            flops=flops, transcendentals=0, bytes_accessed=bytes_accessed),
    )(x, w1, b1, w2, b2, w3, b3)

    return out[:B, :dout]


def init_params(key, input_dim, hidden_dim, output_dim):
    """Deterministic synthetic init (mimics nn.Linear's uniform fan-in init)."""
    ks = jax.random.split(key, 6)

    def linear(kw, kb, fan_in, fan_out):
        bound = 1.0 / jnp.sqrt(fan_in)
        w = jax.random.uniform(kw, (fan_in, fan_out), jnp.float32, -bound, bound)
        b = jax.random.uniform(kb, (1, fan_out), jnp.float32, -bound, bound)
        return w, b

    w1, b1 = linear(ks[0], ks[1], input_dim, hidden_dim)
    w2, b2 = linear(ks[2], ks[3], hidden_dim, hidden_dim)
    w3, b3 = linear(ks[4], ks[5], hidden_dim, output_dim)
    return {"w1": w1, "b1": b1, "w2": w2, "b2": b2, "w3": w3, "b3": b3}


def _reference_forward(x, p):
    h1 = jnp.maximum(x @ p["w1"] + p["b1"], 0.0)
    h2 = jnp.maximum(h1 @ p["w2"] + p["b2"], 0.0)
    return h2 @ p["w3"] + p["b3"]


if __name__ == "__main__":
    # Small shapes consistent with the module's forward; batch large enough
    # that the auto-picked tile yields a multi-step (pipelined) grid.
    batch, input_dim, hidden_dim, output_dim = 128, 16, 32, 4

    key = jax.random.PRNGKey(0)
    k_x, k_p = jax.random.split(key)
    x = jax.random.normal(k_x, (batch, input_dim), dtype=jnp.float32)
    params = init_params(k_p, input_dim, hidden_dim, output_dim)

    out = value_function_forward(x, params)
    out = jax.block_until_ready(out)

    ref = _reference_forward(x, params)
    assert out.shape == (batch, output_dim)
    assert jnp.allclose(out, ref, atol=1e-5, rtol=1e-5), "mismatch vs reference"

    print("KERNEL_OK")
</pallas_src>

<mosaic_0001>
module attributes {stable_mosaic.version = 11 : i64} {
  func.func @_mlp_kernel(%arg0: i32, %arg1: memref<32x16xf32, #tpu.memory_space<vmem>>, %arg2: memref<16x32xf32, #tpu.memory_space<vmem>>, %arg3: memref<1x32xf32, #tpu.memory_space<vmem>>, %arg4: memref<32x32xf32, #tpu.memory_space<vmem>>, %arg5: memref<1x32xf32, #tpu.memory_space<vmem>>, %arg6: memref<32x128xf32, #tpu.memory_space<vmem>>, %arg7: memref<1x128xf32, #tpu.memory_space<vmem>>, %arg8: memref<32x128xf32, #tpu.memory_space<vmem>>) attributes {dimension_semantics = [#tpu.dimension_semantics<parallel>], iteration_bounds = array<i64: 4>, scalar_prefetch = 0 : i64, scratch_operands = 0 : i64, tpu.core_type = #tpu.core_type<tc>, window_params = [{transform_indices = @transform_0, window_bounds = array<i64: 32, 16>}, {pipeline_mode = #tpu.pipeline_mode<synchronous>, transform_indices = @transform_1, window_bounds = array<i64: 16, 32>}, {pipeline_mode = #tpu.pipeline_mode<synchronous>, transform_indices = @transform_2, window_bounds = array<i64: 1, 32>}, {pipeline_mode = #tpu.pipeline_mode<synchronous>, transform_indices = @transform_3, window_bounds = array<i64: 32, 32>}, {pipeline_mode = #tpu.pipeline_mode<synchronous>, transform_indices = @transform_4, window_bounds = array<i64: 1, 32>}, {pipeline_mode = #tpu.pipeline_mode<synchronous>, transform_indices = @transform_5, window_bounds = array<i64: 32, 128>}, {pipeline_mode = #tpu.pipeline_mode<synchronous>, transform_indices = @transform_6, window_bounds = array<i64: 1, 128>}, {transform_indices = @transform_7, window_bounds = array<i64: 32, 128>}]} {
    %c0 = arith.constant 0 : index
    %c0_0 = arith.constant 0 : index
    %0 = vector.load %arg1[%c0, %c0_0] : memref<32x16xf32, #tpu.memory_space<vmem>>, vector<32x16xf32>
    %c0_1 = arith.constant 0 : index
    %c0_2 = arith.constant 0 : index
    %1 = vector.load %arg2[%c0_1, %c0_2] : memref<16x32xf32, #tpu.memory_space<vmem>>, vector<16x32xf32>
    %cst = arith.constant dense<0.000000e+00> : vector<32x32xf32>
    %2 = tpu.matmul %0, %1, %cst {dimension_numbers = #tpu.dot_dimension_numbers<[1], [0], [0], [1], [0, 0, 1, 1], [], []>} : vector<32x16xf32>, vector<16x32xf32>, vector<32x32xf32> -> vector<32x32xf32>
    %c0_3 = arith.constant 0 : index
    %c0_4 = arith.constant 0 : index
    %3 = vector.load %arg3[%c0_3, %c0_4] : memref<1x32xf32, #tpu.memory_space<vmem>>, vector<1x32xf32>
    %4 = vector.broadcast %3 : vector<1x32xf32> to vector<32x32xf32>
    %5 = arith.addf %2, %4 : vector<32x32xf32>
    %cst_5 = arith.constant 0.000000e+00 : f32
    %6 = vector.broadcast %cst_5 : f32 to vector<32x32xf32>
    %7 = arith.maximumf %5, %6 : vector<32x32xf32>
    %c0_6 = arith.constant 0 : index
    %c0_7 = arith.constant 0 : index
    %8 = vector.load %arg4[%c0_6, %c0_7] : memref<32x32xf32, #tpu.memory_space<vmem>>, vector<32x32xf32>
    %cst_8 = arith.constant dense<0.000000e+00> : vector<32x32xf32>
    %9 = tpu.matmul %7, %8, %cst_8 {dimension_numbers = #tpu.dot_dimension_numbers<[1], [0], [0], [1], [0, 0, 1, 1], [], []>} : vector<32x32xf32>, vector<32x32xf32>, vector<32x32xf32> -> vector<32x32xf32>
    %c0_9 = arith.constant 0 : index
    %c0_10 = arith.constant 0 : index
    %10 = vector.load %arg5[%c0_9, %c0_10] : memref<1x32xf32, #tpu.memory_space<vmem>>, vector<1x32xf32>
    %11 = vector.broadcast %10 : vector<1x32xf32> to vector<32x32xf32>
    %12 = arith.addf %9, %11 : vector<32x32xf32>
    %cst_11 = arith.constant 0.000000e+00 : f32
    %13 = vector.broadcast %cst_11 : f32 to vector<32x32xf32>
    %14 = arith.maximumf %12, %13 : vector<32x32xf32>
    %c0_12 = arith.constant 0 : index
    %c0_13 = arith.constant 0 : index
    %15 = vector.load %arg6[%c0_12, %c0_13] : memref<32x128xf32, #tpu.memory_space<vmem>>, vector<32x128xf32>
    %cst_14 = arith.constant dense<0.000000e+00> : vector<32x128xf32>
    %16 = tpu.matmul %14, %15, %cst_14 {dimension_numbers = #tpu.dot_dimension_numbers<[1], [0], [0], [1], [0, 0, 1, 1], [], []>} : vector<32x32xf32>, vector<32x128xf32>, vector<32x128xf32> -> vector<32x128xf32>
    %c0_15 = arith.constant 0 : index
    %c0_16 = arith.constant 0 : index
    %17 = vector.load %arg7[%c0_15, %c0_16] : memref<1x128xf32, #tpu.memory_space<vmem>>, vector<1x128xf32>
    %18 = vector.broadcast %17 : vector<1x128xf32> to vector<32x128xf32>
    %19 = arith.addf %16, %18 : vector<32x128xf32>
    %c0_17 = arith.constant 0 : index
    %c0_18 = arith.constant 0 : index
    %20 = vector.load %arg8[%c0_17, %c0_18] : memref<32x128xf32, #tpu.memory_space<vmem>>, vector<32x128xf32>
    tpu.vector_store %arg8[%c0_17, %c0_18], %19 {strides = array<i32>} : memref<32x128xf32, #tpu.memory_space<vmem>>, vector<32x128xf32>,
    return
  }
  func.func @transform_0(%arg0: i32) -> (i32, i32) {
    %c0_i32 = arith.constant 0 : i32
    %c0_i32_0 = arith.constant 0 : i32
    return %arg0, %c0_i32 : i32, i32
  }
  func.func @transform_1(%arg0: i32) -> (i32, i32) {
    %c0_i32 = arith.constant 0 : i32
    %c0_i32_0 = arith.constant 0 : i32
    %c0_i32_1 = arith.constant 0 : i32
    return %c0_i32, %c0_i32_0 : i32, i32
  }
  func.func @transform_2(%arg0: i32) -> (i32, i32) {
    %c0_i32 = arith.constant 0 : i32
    %c0_i32_0 = arith.constant 0 : i32
    %c0_i32_1 = arith.constant 0 : i32
    return %c0_i32, %c0_i32_0 : i32, i32
  }
  func.func @transform_3(%arg0: i32) -> (i32, i32) {
    %c0_i32 = arith.constant 0 : i32
    %c0_i32_0 = arith.constant 0 : i32
    %c0_i32_1 = arith.constant 0 : i32
    return %c0_i32, %c0_i32_0 : i32, i32
  }
  func.func @transform_4(%arg0: i32) -> (i32, i32) {
    %c0_i32 = arith.constant 0 : i32
    %c0_i32_0 = arith.constant 0 : i32
    %c0_i32_1 = arith.constant 0 : i32
    return %c0_i32, %c0_i32_0 : i32, i32
  }
  func.func @transform_5(%arg0: i32) -> (i32, i32) {
    %c0_i32 = arith.constant 0 : i32
    %c0_i32_0 = arith.constant 0 : i32
    %c0_i32_1 = arith.constant 0 : i32
    return %c0_i32, %c0_i32_0 : i32, i32
  }
  func.func @transform_6(%arg0: i32) -> (i32, i32) {
    %c0_i32 = arith.constant 0 : i32
    %c0_i32_0 = arith.constant 0 : i32
    %c0_i32_1 = arith.constant 0 : i32
    return %c0_i32, %c0_i32_0 : i32, i32
  }
  func.func @transform_7(%arg0: i32) -> (i32, i32) {
    %c0_i32 = arith.constant 0 : i32
    %c0_i32_0 = arith.constant 0 : i32
    return %arg0, %c0_i32 : i32, i32
  }
}

</mosaic_0001>

<bundles_post_ra>
// kernel: tpu_custom_call.1
= control target key start
LH: loop header
LB: loop body
LE: loop exit
PB: predicated region body
PF: predicated region fallthrough
CT: control target
= control target key end

     0   :  { %12 = vsyncpa [#allocation3], 0  ;;  %s1101_s0 = inlined_call_operand.vmem [shape: f32[128,16], index: 0, kind: input, shape index: {}]   ;;  %s1102_s1 = inlined_call_operand.vmem [shape: f32[16,32], index: 1, kind: input, shape index: {}]   ;;  %s1103_s2 = inlined_call_operand.vmem [shape: f32[1,32], index: 2, kind: input, shape index: {}]   ;;  %s1104_s3 = inlined_call_operand.vmem [shape: f32[32,32], index: 3, kind: input, shape index: {}]   ;;  %s1105_s4 = inlined_call_operand.vmem [shape: f32[1,32], index: 4, kind: input, shape index: {}]   ;;  %s1106_s5 = inlined_call_operand.vmem [shape: f32[32,128], index: 5, kind: input, shape index: {}]   ;;  %s1107_s6 = inlined_call_operand.vmem [shape: f32[1,128], index: 6, kind: input, shape index: {}]   ;;  %s1108_s7 = inlined_call_operand.hbm [shape: f32[128,128], index: 7, kind: output, shape index: {}]  }
   0x1   :  { %14 = vsyncpa [#allocation3 + $0x1], 0  ;;  %s952_s24 = smov 0   ;;  %s954_s25 = smov 0  }
   0x2   :  { %s956_s26 = smov 0   ;;  %s958_s27 = smov 0  }
   0x3 LB: > { %s973_s28 = sadd.s32 4294967295, %s907_s27   ;;  %s696_s29 = sadd.s32 4294967294, %s907_s27   ;;  %s907_s27 = sphi %s958_s27, %s1114_s27   ;;  %s903_s26 = sphi %s956_s26, %s1113_s26   ;;  %s899_s25 = sphi %s954_s25, %s1112_s25   ;;  %s895_s24 = sphi %s952_s24, %s1111_s24  }
   0x4   : > { %s977_s30 = sadd.s32 1, %s907_s27   ;;  %s179_s8 = sadd.s32 1, %s903_s26 }
   0x5   : > { %s176_s9 = ssub.s32 %s907_s27, %s977_s30  ;;  %p189_p0 = scmp.ne.s32.totalorder %s903_s26, %s899_s25 }
   0x6   : > { %p177_p1 = scmp.eq.s32.totalorder %s176_s9, 0  ;;  %p190_p2 = scmp.eq.s32.totalorder %s973_s28, 3 }
   0x7   : > { %p195_p3 = scmp.ne.s32.totalorder %s899_s25, %s895_s24  ;;  %p196_p4 = scmp.eq.s32.totalorder %s696_s29, 3 }
   0x8   : > { %s988_s10 = scalar_select %p177_p1, %s903_s26, %s179_s8  }
   0x9   : > { %p990_p5 = por %p190_p2, %p189_p0  ;;  %p994_p6 = por %p196_p4, %p195_p3 }
   0xa   : > { %p699_p7 = scmp.ge.s32.totalorder %s907_s27, 1  ;;  %p241_p8 = scmp.lt.s32.totalorder %s907_s27, 5 }
   0xc   : > { %p242_p9 = pnand %p699_p7, %p241_p8 }
   0xd   : > { %v284_v0 = vld [vmem:[%s1102_s1] sm:$0xff] (!%p242_p9)  ;;  %v285_v1 = vld [vmem:[%s1102_s1 + $0x8] sm:$0xff] (!%p242_p9)  ;;  %s701_s17 = sshll.u32 (!%p242_p9), %s973_s28, 2  ;;  %vm293_vm0 = vcmask (!%p242_p9), 130048   ;;  %v397_v10 = vld [vmem:[%s1104_s3 + $0x10] sm:$0xff] (!%p242_p9)  ;;  %vm406_vm1 = vcmask (!%p242_p9), 261120  }
   0xe   : > { %245 = sbr.rel (%p242_p9) target bundleno = 696 (0x2b8), region = 48  ;;  %v395_v2 = vld [vmem:[%s1104_s3] sm:$0xff] (!%p242_p9)  ;;  %v784_v3 = vpack.c.bf16 (!%p242_p9), %v285_v1, %v284_v0  ;;  %p274_p10 = scmp.lt.s32.totalorder (!%p242_p9), %s701_s17, 15  ;;  %v396_v4 = vld [vmem:[%s1104_s3 + $0x8] sm:$0xff] (!%p242_p9)  ;;  %v398_v11 = vld [vmem:[%s1104_s3 + $0x18] sm:$0xff] (!%p242_p9) }
   0xf   : > { %v788_v5 = vpack.c.bf16 (!%p242_p9), %v396_v4, %v395_v2  ;;  %v792_v12 = vpack.c.bf16 (!%p242_p9), %v398_v11, %v397_v10  ;;  %v508_v13 = vld [vmem:[%s1106_s5] sm:$0xff] (!%p242_p9)  ;;  %v509_v14 = vld [vmem:[%s1106_s5 + $0x8] sm:$0xff] (!%p242_p9)  ;;  %v510_v29 = vld [vmem:[%s1106_s5 + $0x10] sm:$0xff] (!%p242_p9)  ;;  %s270_s14 = sand.u32 (!%p242_p9), 1, %s899_s25   ;;  %s723_s20 = sshll.u32 (!%p242_p9), %s973_s28, 9 }
  0x10   : > { %785 = vmatprep.subr.bf16.mxu0 (!%p242_p9), %v784_v3  ;;  %v796_v15 = vpack.c.bf16 (!%p242_p9), %v509_v14, %v508_v13  ;;  %v703_v16 = vld [vmem:[%s1103_s2] ss:$0 sm:$0xff] (!%p242_p9)  ;;  %v511_v30 = vld [vmem:[%s1106_s5 + $0x18] sm:$0xff] (!%p242_p9)  ;;  %s700_s15 = sshll.u32 (!%p242_p9), %s270_s14, 5  ;;  %s1058_s23 = scalar_lea.hbm (!%p242_p9), %s1108_s7, %s723_s20 }
  0x11   : > { %787 = vmatpush3.bf16.msra.mxu0 (!%p242_p9), %v784_v3  ;;  %789 = vmatprep.subr.bf16.mxu1 (!%p242_p9), %v788_v5  ;;  %v800_v31 = vpack.c.bf16 (!%p242_p9), %v511_v30, %v510_v29  ;;  %v708_v32 = vld [vmem:[%s1105_s4] ss:$0 sm:$0xff] (!%p242_p9)  ;;  %s272_s18 = scalar_lea.vmem (!%p242_p9), [#allocation2], %s700_s15  ;;  %s1060_s29 = scalar_lea.sflag (!%p242_p9), [#allocation3], %s270_s14 }
  0x12   : > { %791 = vmatpush3.bf16.msra.mxu1 (!%p242_p9), %v788_v5  ;;  %797 = vmatprep.subr.bf16.mxu0 (!%p242_p9), %v796_v15  ;;  %v713_v45 = vld [vmem:[%s1107_s6] ss:$0 sm:$0xff] (!%p242_p9)  ;;  %s634_s19 = sshll.u32 (!%p242_p9), %s272_s18, 4  ;;  %s1053_s19 = int_to_ptr.vmem [resolvable:$true] %s634_s19 }
  0x13   : > { %793 = vmatprep.subr.bf16.mxu1 (!%p242_p9), %v792_v12  ;;  %s845_s28 = scalar_lea.vmem (!%p242_p9), %s1053_s19, 512 }
  0x14   : > { %p846_p11 = scmp.ne.s32.totalorder (!%p242_p9), %s1053_s19, %s845_s28 }
  0x15   : > { %s1116_s17 = smov (!%p274_p10, %s701_s17), 15 }
  0x16   : > { %s702_s22 = sshll.u32 %s1116_s17, 3  ;;  %795 = vmatpush3.bf16.msra.mxu1 %v792_v12  ;;  %p847_p12 = pnand %p846_p11, %p990_p5 }
  0x17   : > { %s277_s8 = scalar_lea.vmem %s1101_s0, %s702_s22 }
  0x18   : > { %v280_v6 = vld [vmem:[%s277_s8] sm:$0xff]  ;;  %v281_v7 = vld [vmem:[%s277_s8 + $0x8] sm:$0xff]  ;;  %v282_v8 = vld [vmem:[%s277_s8 + $0x10] sm:$0xff]  ;;  %p848_p13 = pneg %p847_p12 }
  0x19   : > { %750 = vmatprep.mubr.msk.f32.mxu0 %vm293_vm0, %v280_v6  ;;  %v283_v9 = vld [vmem:[%s277_s8 + $0x18] sm:$0xff]  ;;  %s909_s8 = smov [#allocation2]  }
  0x1a   : > { %751 = vmatmul.mubr.msk.f32.vlgmr.msra.gmra.mrb[0].mxu0 %vm293_vm0, %v281_v7  ;;  %s849_s9 = sshll.u32 %s909_s8, 4  ;;  %s850_s9 = int_to_ptr.vmem [resolvable:$false] %s849_s9 }
  0x1b   : > { %753 = vmatprep.mubr.msk.f32.mxu0 %vm293_vm0, %v282_v8  ;;  %799 = vmatpush3.bf16.msra.mxu0 %v796_v15  ;;  %s851_s13 = scalar_lea.vmem %s850_s9, 1024  ;;  %p852_p0 = scmp.lt.s32.totalorder %s1053_s19, %s850_s9 }
  0x1c   : > { %801 = vmatprep.subr.bf16.mxu0 %v800_v31  ;;  %p853_p1 = scmp.lt.s32.totalorder %s851_s13, %s845_s28 }
  0x1e   : > { %754 = vmatmul.mubr.msk.f32.gmra.mrb[2].mxu0 %vm293_vm0, %v283_v9  ;;  %p854_p2 = por %p853_p1, %p852_p0 }
  0x1f   : > { %803 = vmatpush3.bf16.msra.mxu0 %v800_v31 }
  0x20   : > { %p855_p3 = pnand %p854_p2, %p848_p13 }
  0xed   : > { %v752_v17 = vpop.f32.mrb[0].mxu0 }
  0xee   : > { %v378_v18 = vadd.f32 %v752_v17, %v703_v16  ;;  %v372_v19 = vpop.f32.mrb[1].mxu0 }
  0xef   : > { %v373_v20 = vadd.f32 %v703_v16, %v372_v19 }
  0xf0   : > { %v392_v23 = vmax.f32 %v378_v18, 0.0 }
  0xf1   : > { %v391_v21 = vmax.f32 %v373_v20, 0.0  ;;  %v755_v22 = vpop.f32.mrb[2].mxu0 }
  0xf2   : > { %v388_v24 = vadd.f32 %v755_v22, %v703_v16  ;;  %v382_v25 = vpop.f32.mrb[3].mxu0 }
  0xf3   : > { %v383_v26 = vadd.f32 %v703_v16, %v382_v25  ;;  %764 = vmatprep.mubr.msk.f32.mxu1 %vm406_vm1, %v391_v21 }
  0xf4   : > { %765 = vmatmul.mubr.msk.f32.vlgmr.msra.gmra.mrb[0].mxu1 %vm406_vm1, %v392_v23  ;;  %v394_v28 = vmax.f32 %v388_v24, 0.0 }
  0xf5   : > { %v393_v27 = vmax.f32 %v383_v26, 0.0 }
  0xf7   : > { %767 = vmatprep.mubr.msk.f32.mxu1 %vm406_vm1, %v393_v27 }
  0xf8   : > { %768 = vmatmul.mubr.msk.f32.gmra.mrb[2].mxu1 %vm406_vm1, %v394_v28 }
 0x1c7   : > { %v766_v33 = vpop.f32.mrb[0].mxu1 }
 0x1c8   : > { %v491_v34 = vadd.f32 %v766_v33, %v708_v32  ;;  %v485_v35 = vpop.f32.mrb[1].mxu1 }
 0x1c9   : > { %v486_v36 = vadd.f32 %v708_v32, %v485_v35 }
 0x1ca   : > { %v505_v39 = vmax.f32 %v491_v34, 0.0 }
 0x1cb   : > { %v504_v37 = vmax.f32 %v486_v36, 0.0  ;;  %v769_v38 = vpop.f32.mrb[2].mxu1 }
 0x1cc   : > { %v501_v40 = vadd.f32 %v769_v38, %v708_v32  ;;  %v495_v41 = vpop.f32.mrb[3].mxu1 }
 0x1cd   : > { %v496_v42 = vadd.f32 %v708_v32, %v495_v41  ;;  %778 = vmatprep.mubr.msk.f32.mxu0 %vm406_vm1, %v504_v37 }
 0x1ce   : > { %779 = vmatmul.mubr.msk.f32.vlgmr.msra.gmra.mrb[4].mxu0 %vm406_vm1, %v505_v39  ;;  %v507_v44 = vmax.f32 %v501_v40, 0.0 }
 0x1cf   : > { %v506_v43 = vmax.f32 %v496_v42, 0.0 }
 0x1d1   : > { %781 = vmatprep.mubr.msk.f32.mxu0 %vm406_vm1, %v506_v43 }
 0x1d2   : > { %782 = vmatmul.mubr.msk.f32.gmra.mrb[6].mxu0 %vm406_vm1, %v507_v44 }
 0x2a1   : > { %v780_v46 = vpop.f32.mrb[4].mxu0 }
 0x2a2   : > { %v603_v47 = vadd.f32 %v780_v46, %v713_v45  ;;  %v597_v48 = vpop.f32.mrb[5].mxu0 }
 0x2a3   : > { %v598_v49 = vadd.f32 %v713_v45, %v597_v48 }
 0x2a4   : > { %617 = vst [vmem:[%s272_s18 + $0x8] sm:$0xff] %v603_v47 }
 0x2a5   : > { %616 = vst [vmem:[%s272_s18] sm:$0xff] %v598_v49  ;;  %v783_v50 = vpop.f32.mrb[6].mxu0 }
 0x2a6   : > { %v613_v51 = vadd.f32 %v783_v50, %v713_v45  ;;  %v607_v52 = vpop.f32.mrb[7].mxu0 }
 0x2a7   : > { %v608_v53 = vadd.f32 %v713_v45, %v607_v52 }
 0x2a8   : > { %619 = vst [vmem:[%s272_s18 + $0x18] sm:$0xff] %v613_v51 }
 0x2a9   : > { %618 = vst [vmem:[%s272_s18 + $0x10] sm:$0xff] %v608_v53 }
 0x2aa   : > { %858 = shalt.err (!%p855_p3)
}
 0x2ab   : > { %s859_s14 = scalar_lea.hbm %s1058_s23, 512  ;;  %s863_s17 = scalar_lea.hbm %s1108_s7, 2048 }
 0x2ac   : > { %p860_p4 = scmp.ne.s32.totalorder %s1058_s23, %s859_s14  ;;  %p864_p9 = scmp.lt.u32.totalorder %s1058_s23, %s1108_s7 }
 0x2ad   : > { %p865_p10 = scmp.lt.u32.totalorder %s863_s17, %s859_s14  ;;  %p867_p12 = scmp.lt.u32.totalorder %s859_s14, %s1058_s23 }
 0x2ae   : > { %p861_p7 = pnand %p860_p4, %p990_p5 }
 0x2af   : > { %p866_p11 = por %p865_p10, %p864_p9 }
 0x2b0   : > { %p862_p8 = pneg %p861_p7 }
 0x2b1   : > { %p868_p13 = por %p867_p12, %p866_p11 }
 0x2b3   : > { %p869_p0 = pnand %p868_p13, %p862_p8 }
 0x2b5   : > { %872 = shalt.err (!%p869_p0)
}
 0x2b6   : > { %s910_s21 = smov 128   ;;  %s911_s22 = smov 8  }
 0x2b7   : > { %804 = dma.vmem_to_hbm [thread:$0]  (%p990_p5), %s1053_s19, 512, %s1058_s23, %s1060_s29, %s910_s21, %s910_s21, %s911_s22  }
 0x2b8 PF: > { %p810_p1 = scmp.ge.s32.totalorder %s907_s27, 2  ;;  %s649_s28 = sand.u32 1, %s895_s24  }
 0x2b9   : > { %s650_s8 = scalar_lea.sflag [#allocation3], %s649_s28 }
 0x2ba   : > { %p807_p2 = pnand %p810_p1, %p994_p6 }
 0x2bc   : > { %890 = dma.done.wait (!%p807_p2), %s650_s8, 512  }
 0x2bd   : > { %892 = vsyncadd (!%p807_p2), %s650_s8, 4294966784  ;;  %p17_p3 = scmp.ge.s32.totalorder %s977_s30, 6   ;;  %s1111_s24 = smov %s899_s25 }
 0x2be   : > { %s1112_s25 = smov %s903_s26  ;;  %s1113_s26 = smov %s988_s10 }
 0x2bf   : > { %s1114_s27 = smov %s977_s30  ;;  %19 = sbr.rel (!%p17_p3) target bundleno = 3 (0x3), region = 83 }
 0x2c6   :  { %655 = vsyncpa [#allocation3], 1 }
 0x2c7   :  { %657 = vsyncpa [#allocation3 + $0x1], 1 }

</bundles_post_ra>
